<compile_context>
chip_gen: v5e
topology: v5e:2x2
jax: 0.10.0
libtpu: 0.0.40
codegen_flags: <defaults>
</compile_context>

<pallas_src>
import functools

import jax
import jax.numpy as jnp
from jax.experimental import pallas as pl
from jax.experimental.pallas import tpu as pltpu

C_OUT = 128          # fcl.out_features / SKConv features
GROUPS = 8
RATIO = 16
L_MIN = 32
M_BRANCHES = 2
BN_EPS = 1e-5


def _add_kernel(M, x_ref, w1_ref, b1_ref, wlog_ref, blog_ref,
                bn1s_ref, bn1b_ref, o_ref):
    """One batch tile: x [tb, cin] -> out [tb, 128]."""
    mm = w1_ref.dtype   # matmul dtype (bf16); accumulation + elementwise in f32

    # fcl Linear + grouped-conv center tap + BatchNorm2d, all folded at pack
    # time into a single [tb, cin] @ [cin, M*128] MXU call; ReLU on the slab.
    x = x_ref[...].astype(mm)
    packed = jnp.dot(x, w1_ref[...], preferred_element_type=jnp.float32)
    packed = jnp.maximum(packed + b1_ref[...], 0.0)          # [tb, M*128]

    # Sum over branches (GAP over 1x1 spatial == identity).
    fea_u = packed[:, :C_OUT]
    for m in range(1, M):
        fea_u = fea_u + packed[:, m * C_OUT:(m + 1) * C_OUT]

    # Fuse fc (128->d) folded into per-branch fcs (d->128): one
    # [tb,128] @ [128, M*128] MXU call produces all attention logits.
    logits = jnp.dot(fea_u.astype(mm), wlog_ref[...],
                     preferred_element_type=jnp.float32) + blog_ref[...]

    if M == 2:
        # Softmax over 2 branches == sigmoid of the logit difference (exact).
        b0 = packed[:, :C_OUT]
        b1 = packed[:, C_OUT:2 * C_OUT]
        ld = logits[:, :C_OUT] - logits[:, C_OUT:2 * C_OUT]
        w0 = pl.reciprocal(1.0 + jnp.exp(-ld), approx=True)   # sigmoid via EUP
        fea_v = b1 + (b0 - b1) * w0
        o_ref[...] = fea_v * bn1s_ref[...] + bn1b_ref[...]
    else:
        # Generic-M softmax path; bn1 scale folded into the attention weights.
        def branch(m): return packed[:, m * C_OUT:(m + 1) * C_OUT]
        def logit(m):  return logits[:, m * C_OUT:(m + 1) * C_OUT]
        lmax = logit(0)
        for m in range(1, M):
            lmax = jnp.maximum(lmax, logit(m))
        exps = [jnp.exp(logit(m) - lmax) for m in range(M)]
        denom = exps[0]
        for m in range(1, M):
            denom = denom + exps[m]
        scale = pl.reciprocal(denom, approx=True) * bn1s_ref[...]
        fea_v = branch(0) * (exps[0] * scale)
        for m in range(1, M):
            fea_v = fea_v + branch(m) * (exps[m] * scale)
        o_ref[...] = fea_v + bn1b_ref[...]


def add_forward(x, packed, M=M_BRANCHES, tile_b=1024):
    """x: [B, cin] float32 -> [B, 1, 128] float32 (matches torch ADD.forward)."""
    B, cin = x.shape

    # Batch tile: multiple of 8 (f32 sublane).  Cap at ceil(B/2) (rounded up to
    # 8) so there are >= 2 grid steps and the "parallel" axis can shard across
    # v7x's two TensorCores; cap at tile_b so intermediates stay well inside
    # the 32 MiB scoped-VMEM default on all generations (tb<=2048 ~= 10 MiB).
    half = pl.cdiv(B, 2)
    tb = min(tile_b, max(8, ((half + 7) // 8) * 8))
    n_tiles = pl.cdiv(B, tb)   # ragged last tile handled by Pallas partial blocks

    inputs = (
        x,
        packed["w1"], packed["b1"],
        packed["wlog"], packed["blog"],
        packed["bn1_scale"], packed["bn1_shift"],
    )

    def resident(arr):
        # Full-array block with constant index_map -> stays VMEM-resident
        # across grid steps (no re-fetch).
        nd = arr.ndim
        return pl.BlockSpec(arr.shape, lambda i, _nd=nd: (0,) * _nd)

    in_specs = [pl.BlockSpec((tb, cin), lambda i: (i, 0))]
    in_specs += [resident(a) for a in inputs[1:]]

    out = pl.pallas_call(
        functools.partial(_add_kernel, M),
        out_shape=jax.ShapeDtypeStruct((B, C_OUT), jnp.float32),
        grid=(n_tiles,),
        in_specs=in_specs,
        out_specs=pl.BlockSpec((tb, C_OUT), lambda i: (i, 0)),
        compiler_params=pltpu.CompilerParams(
            dimension_semantics=("parallel",)),
    )(*inputs)

    return out.reshape(B, 1, C_OUT)


def _fold_bn(gamma, beta, mean, var, eps=BN_EPS):
    scale = gamma / jnp.sqrt(var + eps)
    shift = beta - mean * scale
    return scale, shift


def make_params(key, cin, M=M_BRANCHES, groups=GROUPS, ratio=RATIO):
    """Raw (torch-layout-equivalent) inference-mode parameters."""
    d = max(C_OUT // ratio, L_MIN)                 # = 32
    cpg = C_OUT // groups                          # channels per group = 16
    ks = jax.random.split(key, 16)

    # FullyConnected: assumed nn.Linear(cin, 128), stored as [cin, 128].
    # TODO(synk): FulllyConnectedLayer.FullyConnected internals not given; if it
    #             contains an activation/BN, the fcl->conv fold below is invalid.
    wfc = jax.random.normal(ks[0], (cin, C_OUT), jnp.float32) * (1.0 / jnp.sqrt(cin))
    bfc = jax.random.normal(ks[1], (1, C_OUT), jnp.float32) * 0.01

    # SKConv grouped-conv center taps -> densified block-diagonal [in, out].
    w_center = jax.random.normal(ks[2], (M, C_OUT, cpg), jnp.float32) * (1.0 / jnp.sqrt(cpg))
    wconv = jnp.zeros((M, C_OUT, C_OUT), jnp.float32)  # [M, in, out]
    for g in range(groups):
        oc = slice(g * cpg, (g + 1) * cpg)
        wconv = wconv.at[:, oc, oc].set(jnp.swapaxes(w_center[:, oc, :], 1, 2))
    bconv = jax.random.normal(ks[3], (M, 1, C_OUT), jnp.float32) * 0.01

    # Per-branch BatchNorm2d (inference stats).
    g2 = 1.0 + 0.1 * jax.random.normal(ks[4], (M, 1, C_OUT), jnp.float32)
    b2 = 0.1 * jax.random.normal(ks[5], (M, 1, C_OUT), jnp.float32)
    m2 = 0.1 * jax.random.normal(ks[6], (M, 1, C_OUT), jnp.float32)
    v2 = 1.0 + 0.1 * jax.random.uniform(ks[7], (M, 1, C_OUT), jnp.float32)
    bn2_scale, bn2_shift = _fold_bn(g2, b2, m2, v2)

    # SKConv fuse fc: assumed plain nn.Linear(128, d), stored [128, d].
    # TODO(synk): if the SKConv fc is Sequential(Linear, BN, ReLU), the wz@wfcs
    #             fold in pack_params is invalid; keep it separate in that case.
    wz = jax.random.normal(ks[8], (C_OUT, d), jnp.float32) * (1.0 / jnp.sqrt(C_OUT))
    bz = jax.random.normal(ks[9], (1, d), jnp.float32) * 0.01

    # Per-branch fcs: nn.Linear(d, 128), stored [d, 128].
    wfcs = jax.random.normal(ks[10], (M, d, C_OUT), jnp.float32) * (1.0 / jnp.sqrt(d))
    bfcs = jax.random.normal(ks[11], (M, 1, C_OUT), jnp.float32) * 0.01

    # Final BatchNorm1d(128) (inference stats).
    g1 = 1.0 + 0.1 * jax.random.normal(ks[12], (1, C_OUT), jnp.float32)
    b1 = 0.1 * jax.random.normal(ks[13], (1, C_OUT), jnp.float32)
    m1 = 0.1 * jax.random.normal(ks[14], (1, C_OUT), jnp.float32)
    v1 = 1.0 + 0.1 * jax.random.uniform(ks[15], (1, C_OUT), jnp.float32)
    bn1_scale, bn1_shift = _fold_bn(g1, b1, m1, v1)

    return dict(wfc=wfc, bfc=bfc, wconv=wconv, bconv=bconv,
                bn2_scale=bn2_scale, bn2_shift=bn2_shift,
                wz=wz, bz=bz, wfcs=wfcs, bfcs=bfcs,
                bn1_scale=bn1_scale, bn1_shift=bn1_shift)


def pack_params(p, M=M_BRANCHES, mm_dtype=jnp.bfloat16):
    """Fold fcl->conv->BN2 into one packed weight, fuse-fc->fcs into one packed
    logit weight, pack per-branch matmuls along the output axis, cast matmul
    weights to bf16 (biases / BN1 stay f32)."""
    # BN2 fold (exact in inference mode): y*s + t with s,t per branch.
    wconv_f = p["wconv"] * p["bn2_scale"]                       # [M,128,128]
    bconv_f = p["bconv"] * p["bn2_scale"] + p["bn2_shift"]      # [M,1,128]

    # fcl Linear folded into the conv (valid: no nonlinearity in between).
    w1 = jnp.einsum("ci,mio->mco", p["wfc"], wconv_f)           # [M, cin, 128]
    b1 = jnp.einsum("bi,mio->mbo", p["bfc"], wconv_f) + bconv_f  # [M, 1, 128]
    w1_packed = jnp.concatenate([w1[m] for m in range(M)], axis=1)   # [cin, M*128]
    b1_packed = jnp.concatenate([b1[m] for m in range(M)], axis=1)   # [1,   M*128]

    # Fuse fc folded into the per-branch fcs (valid for a plain Linear fc).
    wlog = jnp.einsum("cd,mdo->mco", p["wz"], p["wfcs"])                 # [M,128,128]
    blog = jnp.einsum("bd,mdo->mbo", p["bz"], p["wfcs"]) + p["bfcs"]     # [M,1,128]
    wlog_packed = jnp.concatenate([wlog[m] for m in range(M)], axis=1)   # [128, M*128]
    blog_packed = jnp.concatenate([blog[m] for m in range(M)], axis=1)   # [1,   M*128]

    return dict(
        w1=w1_packed.astype(mm_dtype), b1=b1_packed,
        wlog=wlog_packed.astype(mm_dtype), blog=blog_packed,
        bn1_scale=p["bn1_scale"], bn1_shift=p["bn1_shift"],
    )


def add_reference(x, p, M=M_BRANCHES):
    """Pure-JAX f32 reference (unfolded), matches the torch forward semantics."""
    h = x @ p["wfc"] + p["bfc"]
    branches = []
    for m in range(M):
        y = h @ p["wconv"][m] + p["bconv"][m]
        y = y * p["bn2_scale"][m] + p["bn2_shift"][m]
        branches.append(jnp.maximum(y, 0.0))
    fea_u = branches[0]
    for m in range(1, M):
        fea_u = fea_u + branches[m]
    fea_z = fea_u @ p["wz"] + p["bz"]
    logits = jnp.stack([fea_z @ p["wfcs"][m] + p["bfcs"][m] for m in range(M)], 0)
    attn = jax.nn.softmax(logits, axis=0)
    fea_v = sum(branches[m] * attn[m] for m in range(M))
    out = fea_v * p["bn1_scale"] + p["bn1_shift"]
    return out.reshape(x.shape[0], 1, C_OUT)


if __name__ == "__main__":
    key = jax.random.PRNGKey(0)
    k_x, k_p = jax.random.split(key)

    B, CIN = 16, 32                                 # add_in_channel = 32
    x = jax.random.normal(k_x, (B, CIN), jnp.float32)
    raw = make_params(k_p, CIN)
    params = pack_params(raw)

    out = jax.block_until_ready(add_forward(x, params))
    assert out.shape == (B, 1, C_OUT)
    assert bool(jnp.all(jnp.isfinite(out)))

    ref = add_reference(x, raw)
    err = float(jnp.max(jnp.abs(out - ref)))
    scale = float(jnp.max(jnp.abs(ref))) + 1.0
    assert err <= 5e-2 * scale, f"kernel/reference mismatch: {err} (scale {scale})"

    print("KERNEL_OK")
</pallas_src>

<mosaic_0001>
module attributes {stable_mosaic.version = 11 : i64} {
  func.func @_add_kernel(%arg0: i32, %arg1: memref<8x32xf32, #tpu.memory_space<vmem>>, %arg2: memref<32x256xbf16, #tpu.memory_space<vmem>>, %arg3: memref<1x256xf32, #tpu.memory_space<vmem>>, %arg4: memref<128x256xbf16, #tpu.memory_space<vmem>>, %arg5: memref<1x256xf32, #tpu.memory_space<vmem>>, %arg6: memref<1x128xf32, #tpu.memory_space<vmem>>, %arg7: memref<1x128xf32, #tpu.memory_space<vmem>>, %arg8: memref<8x128xf32, #tpu.memory_space<vmem>>) attributes {dimension_semantics = [#tpu.dimension_semantics<parallel>], iteration_bounds = array<i64: 2>, scalar_prefetch = 0 : i64, scratch_operands = 0 : i64, tpu.core_type = #tpu.core_type<tc>, window_params = [{transform_indices = @transform_0, window_bounds = array<i64: 8, 32>}, {pipeline_mode = #tpu.pipeline_mode<synchronous>, transform_indices = @transform_1, window_bounds = array<i64: 32, 256>}, {pipeline_mode = #tpu.pipeline_mode<synchronous>, transform_indices = @transform_2, window_bounds = array<i64: 1, 256>}, {pipeline_mode = #tpu.pipeline_mode<synchronous>, transform_indices = @transform_3, window_bounds = array<i64: 128, 256>}, {pipeline_mode = #tpu.pipeline_mode<synchronous>, transform_indices = @transform_4, window_bounds = array<i64: 1, 256>}, {pipeline_mode = #tpu.pipeline_mode<synchronous>, transform_indices = @transform_5, window_bounds = array<i64: 1, 128>}, {pipeline_mode = #tpu.pipeline_mode<synchronous>, transform_indices = @transform_6, window_bounds = array<i64: 1, 128>}, {transform_indices = @transform_7, window_bounds = array<i64: 8, 128>}]} {
    %c0 = arith.constant 0 : index
    %c0_0 = arith.constant 0 : index
    %0 = vector.load %arg1[%c0, %c0_0] : memref<8x32xf32, #tpu.memory_space<vmem>>, vector<8x32xf32>
    %1 = arith.truncf %0 : vector<8x32xf32> to vector<8x32xbf16>
    %c0_1 = arith.constant 0 : index
    %c0_2 = arith.constant 0 : index
    %2 = vector.load %arg2[%c0_1, %c0_2] : memref<32x256xbf16, #tpu.memory_space<vmem>>, vector<32x256xbf16>
    %cst = arith.constant dense<0.000000e+00> : vector<8x256xf32>
    %3 = tpu.matmul %1, %2, %cst {dimension_numbers = #tpu.dot_dimension_numbers<[1], [0], [0], [1], [0, 0, 1, 1], [], []>} : vector<8x32xbf16>, vector<32x256xbf16>, vector<8x256xf32> -> vector<8x256xf32>
    %c0_3 = arith.constant 0 : index
    %c0_4 = arith.constant 0 : index
    %4 = vector.load %arg3[%c0_3, %c0_4] : memref<1x256xf32, #tpu.memory_space<vmem>>, vector<1x256xf32>
    %5 = vector.broadcast %4 : vector<1x256xf32> to vector<8x256xf32>
    %6 = arith.addf %3, %5 : vector<8x256xf32>
    %cst_5 = arith.constant 0.000000e+00 : f32
    %7 = vector.broadcast %cst_5 : f32 to vector<8x256xf32>
    %8 = arith.maximumf %6, %7 : vector<8x256xf32>
    %9 = vector.extract_strided_slice %8 {offsets = [0, 0], sizes = [8, 128], strides = [1, 1]} : vector<8x256xf32> to vector<8x128xf32>
    %10 = vector.extract_strided_slice %8 {offsets = [0, 128], sizes = [8, 128], strides = [1, 1]} : vector<8x256xf32> to vector<8x128xf32>
    %11 = arith.addf %9, %10 : vector<8x128xf32>
    %12 = arith.truncf %11 : vector<8x128xf32> to vector<8x128xbf16>
    %c0_6 = arith.constant 0 : index
    %c0_7 = arith.constant 0 : index
    %13 = vector.load %arg4[%c0_6, %c0_7] : memref<128x256xbf16, #tpu.memory_space<vmem>>, vector<128x256xbf16>
    %cst_8 = arith.constant dense<0.000000e+00> : vector<8x256xf32>
    %14 = tpu.matmul %12, %13, %cst_8 {dimension_numbers = #tpu.dot_dimension_numbers<[1], [0], [0], [1], [0, 0, 1, 1], [], []>} : vector<8x128xbf16>, vector<128x256xbf16>, vector<8x256xf32> -> vector<8x256xf32>
    %c0_9 = arith.constant 0 : index
    %c0_10 = arith.constant 0 : index
    %15 = vector.load %arg5[%c0_9, %c0_10] : memref<1x256xf32, #tpu.memory_space<vmem>>, vector<1x256xf32>
    %16 = vector.broadcast %15 : vector<1x256xf32> to vector<8x256xf32>
    %17 = arith.addf %14, %16 : vector<8x256xf32>
    %18 = vector.extract_strided_slice %8 {offsets = [0, 0], sizes = [8, 128], strides = [1, 1]} : vector<8x256xf32> to vector<8x128xf32>
    %19 = vector.extract_strided_slice %8 {offsets = [0, 128], sizes = [8, 128], strides = [1, 1]} : vector<8x256xf32> to vector<8x128xf32>
    %20 = vector.extract_strided_slice %17 {offsets = [0, 0], sizes = [8, 128], strides = [1, 1]} : vector<8x256xf32> to vector<8x128xf32>
    %21 = vector.extract_strided_slice %17 {offsets = [0, 128], sizes = [8, 128], strides = [1, 1]} : vector<8x256xf32> to vector<8x128xf32>
    %22 = arith.subf %20, %21 : vector<8x128xf32>
    %cst_11 = arith.constant 0.000000e+00 : f32
    %23 = vector.broadcast %cst_11 : f32 to vector<8x128xf32>
    %24 = arith.subf %23, %22 : vector<8x128xf32>
    %25 = math.exp %24 : vector<8x128xf32>
    %cst_12 = arith.constant 1.000000e+00 : f32
    %26 = vector.broadcast %cst_12 : f32 to vector<8x128xf32>
    %27 = arith.addf %26, %25 : vector<8x128xf32>
    %28 = tpu.reciprocal %27 {approx = true} : vector<8x128xf32> -> vector<8x128xf32>
    %29 = arith.subf %18, %19 : vector<8x128xf32>
    %30 = arith.mulf %29, %28 : vector<8x128xf32>
    %31 = arith.addf %19, %30 : vector<8x128xf32>
    %c0_13 = arith.constant 0 : index
    %c0_14 = arith.constant 0 : index
    %32 = vector.load %arg6[%c0_13, %c0_14] : memref<1x128xf32, #tpu.memory_space<vmem>>, vector<1x128xf32>
    %33 = vector.broadcast %32 : vector<1x128xf32> to vector<8x128xf32>
    %34 = arith.mulf %31, %33 : vector<8x128xf32>
    %c0_15 = arith.constant 0 : index
    %c0_16 = arith.constant 0 : index
    %35 = vector.load %arg7[%c0_15, %c0_16] : memref<1x128xf32, #tpu.memory_space<vmem>>, vector<1x128xf32>
    %36 = vector.broadcast %35 : vector<1x128xf32> to vector<8x128xf32>
    %37 = arith.addf %34, %36 : vector<8x128xf32>
    %c0_17 = arith.constant 0 : index
    %c0_18 = arith.constant 0 : index
    %38 = vector.load %arg8[%c0_17, %c0_18] : memref<8x128xf32, #tpu.memory_space<vmem>>, vector<8x128xf32>
    tpu.vector_store %arg8[%c0_17, %c0_18], %37 {strides = array<i32>} : memref<8x128xf32, #tpu.memory_space<vmem>>, vector<8x128xf32>,
    return
  }
  func.func @transform_0(%arg0: i32) -> (i32, i32) {
    %c0_i32 = arith.constant 0 : i32
    %c0_i32_0 = arith.constant 0 : i32
    return %arg0, %c0_i32 : i32, i32
  }
  func.func @transform_1(%arg0: i32) -> (i32, i32) {
    %c0_i32 = arith.constant 0 : i32
    %c0_i32_0 = arith.constant 0 : i32
    %c0_i32_1 = arith.constant 0 : i32
    return %c0_i32, %c0_i32_0 : i32, i32
  }
  func.func @transform_2(%arg0: i32) -> (i32, i32) {
    %c0_i32 = arith.constant 0 : i32
    %c0_i32_0 = arith.constant 0 : i32
    %c0_i32_1 = arith.constant 0 : i32
    return %c0_i32, %c0_i32_0 : i32, i32
  }
  func.func @transform_3(%arg0: i32) -> (i32, i32) {
    %c0_i32 = arith.constant 0 : i32
    %c0_i32_0 = arith.constant 0 : i32
    %c0_i32_1 = arith.constant 0 : i32
    return %c0_i32, %c0_i32_0 : i32, i32
  }
  func.func @transform_4(%arg0: i32) -> (i32, i32) {
    %c0_i32 = arith.constant 0 : i32
    %c0_i32_0 = arith.constant 0 : i32
    %c0_i32_1 = arith.constant 0 : i32
    return %c0_i32, %c0_i32_0 : i32, i32
  }
  func.func @transform_5(%arg0: i32) -> (i32, i32) {
    %c0_i32 = arith.constant 0 : i32
    %c0_i32_0 = arith.constant 0 : i32
    %c0_i32_1 = arith.constant 0 : i32
    return %c0_i32, %c0_i32_0 : i32, i32
  }
  func.func @transform_6(%arg0: i32) -> (i32, i32) {
    %c0_i32 = arith.constant 0 : i32
    %c0_i32_0 = arith.constant 0 : i32
    %c0_i32_1 = arith.constant 0 : i32
    return %c0_i32, %c0_i32_0 : i32, i32
  }
  func.func @transform_7(%arg0: i32) -> (i32, i32) {
    %c0_i32 = arith.constant 0 : i32
    %c0_i32_0 = arith.constant 0 : i32
    return %arg0, %c0_i32 : i32, i32
  }
}

</mosaic_0001>

<bundles_post_ra>
// kernel: tpu_custom_call.1
= control target key start
LH: loop header
LB: loop body
LE: loop exit
PB: predicated region body
PF: predicated region fallthrough
CT: control target
= control target key end

     0   :  { %s1289_s0 = inlined_call_operand.hbm [shape: f32[16,32], index: 0, kind: input, shape index: {}]   ;;  %s1290_s1 = inlined_call_operand.hbm [shape: bf16[32,256], index: 1, kind: input, shape index: {}]   ;;  %s1291_s2 = inlined_call_operand.hbm [shape: f32[1,256], index: 2, kind: input, shape index: {}]   ;;  %s1292_s3 = inlined_call_operand.hbm [shape: bf16[128,256], index: 3, kind: input, shape index: {}]   ;;  %s1293_s4 = inlined_call_operand.vmem [shape: f32[1,256], index: 4, kind: input, shape index: {}]   ;;  %s1294_s5 = inlined_call_operand.vmem [shape: f32[1,128], index: 5, kind: input, shape index: {}]   ;;  %s1295_s6 = inlined_call_operand.vmem [shape: f32[1,128], index: 6, kind: input, shape index: {}]   ;;  %s1296_s7 = inlined_call_operand.hbm [shape: f32[16,128], index: 7, kind: output, shape index: {}]  }
   0x1   :  { %1297 = sst [smem:[#allocation15_spill]] %s1290_s1 }
   0x2   :  { %12 = vsyncpa [#allocation3], 0 }
   0x3   :  { %14 = vsyncpa [#allocation3 + $0x1], 0 }
   0x4   :  { %15 = vsyncpa [#allocation6], 0 }
   0x5   :  { %16 = vsyncpa [#allocation9], 0 }
   0x6   :  { %17 = vsyncpa [#allocation4], 0 }
   0x7   :  { %19 = vsyncpa [#allocation4 + $0x1], 0  ;;  %s1120_s24 = smov 0   ;;  %s1122_s25 = smov 0  }
   0x8   :  { %s1124_s26 = smov 0   ;;  %s1126_s27 = smov 0  }
   0x9 LB: > { %s1298_s1 = sld [smem:[#allocation15_spill]]  ;;  %s1144_s8 = sadd.s32 4294967295, %s1073_s27   ;;  %s1073_s27 = sphi %s1126_s27, %s1309_s27   ;;  %s1069_s26 = sphi %s1124_s26, %s1308_s26   ;;  %s1065_s25 = sphi %s1122_s25, %s1307_s25   ;;  %s1061_s24 = sphi %s1120_s24, %s1306_s24  }
   0xa   : > { %p675_p0 = scmp.ge.s32.totalorder %s1073_s27, 1  ;;  %p46_p1 = scmp.eq.s32.totalorder %s1144_s8, 0 }
   0xb   : > { %p208_p2 = scmp.lt.s32.totalorder %s1073_s27, 3  ;;  %s1075_s10 = smov [#allocation5]  }
   0xc   : > { %s221_s11 = sshll.u32 %s1075_s10, 4  ;;  %s234_s14 = sshll.u32 %s1291_s2, 4  ;;  %s222_s11 = int_to_ptr.vmem [resolvable:$true] %s221_s11  ;;  %s235_s14 = int_to_ptr.hbm [resolvable:$true] %s234_s14 }
   0xd   : > { %p1149_p3 = pnand %p675_p0, %p208_p2  ;;  %s245_s18 = sshll.u32 %s1292_s3, 4  ;;  %s246_s18 = int_to_ptr.hbm [resolvable:$true] %s245_s18 }
   0xe   : > { %s1076_s19 = smov [#allocation7]   ;;  %s1077_s21 = smov 128  }
   0xf   : > { %s219_s30 = sshll.u32 %s1298_s1, 4  ;;  %p810_p4 = pneg %p1149_p3  ;;  %s220_s30 = int_to_ptr.hbm [resolvable:$true] %s219_s30 }
  0x10   : > { %s236_s20 = sshll.u32 %s1076_s19, 4  ;;  %s1078_s22 = smov 8   ;;  %s237_s20 = int_to_ptr.vmem [resolvable:$true] %s236_s20 }
  0x11   : > { %p1161_p6 = pnand %p810_p4, %p46_p1  ;;  %s1079_s23 = smov [#allocation8]  }
  0x12   : > { %s247_s28 = sshll.u32 %s1079_s23, 4  ;;  %s674_s29 = sadd.s32 4294967294, %s1073_s27   ;;  %s248_s28 = int_to_ptr.vmem [resolvable:$true] %s247_s28 }
  0x13   : > { %813 = dma.hbm_to_vmem [thread:$0]  (!%p1161_p6), %s220_s30, 512, %s222_s11, [#allocation6], %s1077_s21, %s1077_s21, %s1078_s22  }
  0x14   : > { %816 = dma.hbm_to_vmem [thread:$0]  (!%p1161_p6), %s235_s14, 32, %s237_s20, [#allocation6]  }
  0x15   : > { %819 = dma.hbm_to_vmem [thread:$0]  (!%p1161_p6), %s246_s18, 2048, %s248_s28, [#allocation9], %s1077_s21, %s1077_s21, %s1078_s22  }
  0x16   : > { %s1176_s10 = sadd.s32 1, %s1073_s27   ;;  %s32_s12 = sadd.s32 1, %s1069_s26 }
  0x17   : > { %s29_s30 = ssub.s32 %s1073_s27, %s1176_s10  ;;  %p39_p7 = scmp.ne.s32.totalorder %s1069_s26, %s1065_s25 }
  0x18   : > { %p30_p8 = scmp.eq.s32.totalorder %s29_s30, 0  ;;  %p40_p9 = scmp.eq.s32.totalorder %s1073_s27, 0 }
  0x19   : > { %p45_p10 = scmp.ne.s32.totalorder %s1065_s25, %s1061_s24  ;;  %p195_p11 = scmp.eq.s32.totalorder %s1144_s8, 1 }
  0x1a   : > { %s1188_s11 = scalar_select %p30_p8, %s1069_s26, %s32_s12  }
  0x1b   : > { %p1192_p12 = por %p46_p1, %p45_p10  ;;  %p1196_p13 = por %p195_p11, %p39_p7 }
  0x1c   : > { %p201_p0 = scmp.eq.s32.totalorder %s674_s29, 1  ;;  %p41_p2 = por %p40_p9, %p39_p7 }
  0x1d   : > { %s270_s15 = sand.u32 1, %s1069_s26   ;;  %p831_p6 = scmp.lt.s32.totalorder %s1073_s27, 2 }
  0x1e   : > { %p1201_p4 = por %p201_p0, %p45_p10  ;;  %s680_s17 = sshll.u32 %s270_s15, 3 }
  0x1f   : > { %s681_s18 = sshll.u32 %s1073_s27, 3  ;;  %s274_s23 = scalar_lea.vmem [#allocation2], %s680_s17 }
  0x20   : > { %s278_s21 = scalar_lea.hbm %s1289_s0, %s681_s18  ;;  %s282_s28 = sshll.u32 %s274_s23, 4  ;;  %s283_s28 = int_to_ptr.vmem [resolvable:$true] %s282_s28 }
  0x21   : > { %s280_s22 = sshll.u32 %s278_s21, 4  ;;  %p1210_p8 = pnand %p831_p6, %p41_p2  ;;  %s281_s22 = int_to_ptr.hbm [resolvable:$true] %s280_s22 }
  0x22   : > { %s271_s12 = scalar_lea.sflag [#allocation3], %s270_s15  ;;  %s969_s30 = sshra.s32 %s281_s22, 4  ;;  %s970_s30 = int_to_ptr.hbm [resolvable:$true] %s969_s30 }
  0x23   : > { %s971_s1 = scalar_lea.hbm %s970_s30, 8  ;;  %p973_p9 = pneg %p1210_p8 }
  0x24   : > { %p972_p7 = scmp.ne.s32.totalorder %s970_s30, %s971_s1  ;;  %s976_s17 = scalar_lea.hbm %s1289_s0, 16 }
  0x25   : > { %p977_p0 = scmp.lt.s32.totalorder %s970_s30, %s1289_s0  ;;  %p978_p2 = scmp.lt.s32.totalorder %s976_s17, %s971_s1 }
  0x26   : > { %p974_p10 = pnand %p973_p9, %p972_p7 }
  0x27   : > { %p979_p6 = por %p978_p2, %p977_p0 }
  0x28   : > { %p975_p11 = pneg %p974_p10 }
  0x2a   : > { %p980_p5 = pnand %p979_p6, %p975_p11 }
  0x2c   : > { %983 = shalt.err (!%p980_p5)
}
  0x2d   : > { %823 = dma.hbm_to_vmem [thread:$0]  (!%p1210_p8), %s281_s22, 128, %s283_s28, %s271_s12  }
  0x2e   : > { %291 = sbr.rel (%p1149_p3) target bundleno = 368 (0x170), region = 48  ;;  %s1227_s15 = sand.u32 (!%p1149_p3), 1, %s1065_s25  }
  0x2f   : > { %s683_s23 = sshll.u32 (!%p1149_p3), %s1227_s15, 3  ;;  %s294_s18 = scalar_lea.sflag (!%p1149_p3), [#allocation3], %s1227_s15 }
  0x30   : > { %s297_s1 = scalar_lea.vmem (!%p1149_p3), [#allocation2], %s683_s23 }
  0x33   : > { %1044 = dma.done.wait (%p1192_p12), %s294_s18, 128  }
  0x34   : > { %1046 = vsyncadd (%p1192_p12), %s294_s18, 4294967168 }
  0x35   : > { %1048 = dma.done.wait (%p46_p1), [#allocation6], 544  }
  0x36   : > { %1050 = vsyncadd (%p46_p1), [#allocation6], 4294966752 }
  0x37   : > { %1052 = dma.done.wait (%p46_p1), [#allocation9], 2048  }
  0x38   : > { %1054 = vsyncadd (%p46_p1), [#allocation9], 4294965248  ;;  %v698_v0 = vld [vmem:[#allocation5 + $0x10] sm:$0xf]  ;;  %v777_v1 = vld [vmem:[#allocation5 + $0x14] sm:$0xf0] }
  0x39   : > { %v776_v2 = vld [vmem:[#allocation5 + $0x14] sm:$0xf]  ;;  %v699_v3 = vor.u32 %v777_v1, %v698_v0  ;;  %v700_v4 = vld [vmem:[#allocation5 + $0x18] sm:$0xf0]  ;;  %v690_v5 = vld [vmem:[#allocation5] sm:$0xf] }
  0x3a   : > { %v775_v6 = vld [vmem:[#allocation5 + $0x4] sm:$0xf0]  ;;  %v703_v7 = vor.u32 %v776_v2, %v700_v4  ;;  %v774_v8 = vld [vmem:[#allocation5 + $0x4] sm:$0xf]  ;;  %v692_v9 = vld [vmem:[#allocation5 + $0x8] sm:$0xf0] }
  0x3b   : > { %v345_v10 = vld [vmem:[%s297_s1] sm:$0xff]  ;;  %387 = vmatpush.bf16.msra.mxu0 %v699_v3  ;;  %v691_v11 = vor.u32 %v775_v6, %v690_v5  ;;  %v695_v15 = vor.u32 %v774_v8, %v692_v9  ;;  %v756_v18 = vld [vmem:[#allocation8 + $0x60] sm:$0xf]  ;;  %v791_v19 = vld [vmem:[#allocation8 + $0x64] sm:$0xf0]  ;;  %vm377_vm0 = vcmask 261120  }
  0x3c   : > { %v764_v12 = vld [vmem:[#allocation8 + $0x70] sm:$0xf]  ;;  %v793_v13 = vld [vmem:[#allocation8 + $0x74] sm:$0xf0]  ;;  %v792_v14 = vld [vmem:[#allocation8 + $0x74] sm:$0xf]  ;;  %400 = vmatpush.bf16.msra.mxu1 %v703_v7  ;;  %v346_v23 = vpack.c.bf16 %v345_v10, %v345_v10  ;;  %v757_v24 = vor.u32 %v791_v19, %v756_v18 }
  0x3d   : > { %v765_v16 = vor.u32 %v793_v13, %v764_v12  ;;  %v766_v17 = vld [vmem:[#allocation8 + $0x78] sm:$0xf0]  ;;  %v790_v21 = vld [vmem:[#allocation8 + $0x64] sm:$0xf]  ;;  %v758_v22 = vld [vmem:[#allocation8 + $0x68] sm:$0xf0] }
  0x3e   : > { %v769_v20 = vor.u32 %v792_v14, %v766_v17  ;;  %v761_v25 = vor.u32 %v790_v21, %v758_v22  ;;  %v748_v26 = vld [vmem:[#allocation8 + $0x50] sm:$0xf]  ;;  %v789_v27 = vld [vmem:[#allocation8 + $0x54] sm:$0xf0]  ;;  %v788_v28 = vld [vmem:[#allocation8 + $0x54] sm:$0xf] }
  0x3f   : > { %513 = vmatpush.bf16.msra.mxu2 %v765_v16  ;;  %388 = vmatpush.bf16.msra.mxu0 %v691_v11  ;;  %v750_v29 = vld [vmem:[#allocation8 + $0x58] sm:$0xf0]  ;;  %v749_v30 = vor.u32 %v789_v27, %v748_v26  ;;  %v740_v31 = vld [vmem:[#allocation8 + $0x40] sm:$0xf]  ;;  %v787_v33 = vld [vmem:[#allocation8 + $0x44] sm:$0xf0] }
  0x40   : > { %526 = vmatpush.bf16.msra.mxu3 %v769_v20  ;;  %401 = vmatpush.bf16.msra.mxu1 %v695_v15  ;;  %v753_v32 = vor.u32 %v788_v28, %v750_v29  ;;  %v786_v34 = vld [vmem:[#allocation8 + $0x44] sm:$0xf]  ;;  %v742_v35 = vld [vmem:[#allocation8 + $0x48] sm:$0xf0]  ;;  %v741_v36 = vor.u32 %v787_v33, %v740_v31  ;;  %v732_v38 = vld [vmem:[#allocation8 + $0x30] sm:$0xf] }
  0x41   : > { %v745_v37 = vor.u32 %v786_v34, %v742_v35  ;;  %v785_v39 = vld [vmem:[#allocation8 + $0x34] sm:$0xf0]  ;;  %v784_v40 = vld [vmem:[#allocation8 + $0x34] sm:$0xf]  ;;  %v734_v41 = vld [vmem:[#allocation8 + $0x38] sm:$0xf0] }
  0x42   : > { %704 = vmatmul.msk.bf16.vlgmr.msra.gmra.mxu0 %vm377_vm0, %v346_v23  ;;  %v733_v42 = vor.u32 %v785_v39, %v732_v38  ;;  %v737_v43 = vor.u32 %v784_v40, %v734_v41  ;;  %v724_v44 = vld [vmem:[#allocation8 + $0x20] sm:$0xf]  ;;  %v783_v45 = vld [vmem:[#allocation8 + $0x24] sm:$0xf0]  ;;  %v782_v46 = vld [vmem:[#allocation8 + $0x24] sm:$0xf] }
  0x43   : > { %514 = vmatpush.bf16.msra.mxu2 %v757_v24  ;;  %705 = vmatmul.msk.bf16.vlgmr.msra.gmra.mxu1 %vm377_vm0, %v346_v23  ;;  %v726_v47 = vld [vmem:[#allocation8 + $0x28] sm:$0xf0]  ;;  %v725_v48 = vor.u32 %v783_v45, %v724_v44  ;;  %v716_v50 = vld [vmem:[#allocation8 + $0x10] sm:$0xf]  ;;  %v781_v51 = vld [vmem:[#allocation8 + $0x14] sm:$0xf0] }
  0x44   : > { %527 = vmatpush.bf16.msra.mxu3 %v761_v25  ;;  %v729_v49 = vor.u32 %v782_v46, %v726_v47  ;;  %v717_v52 = vor.u32 %v781_v51, %v716_v50  ;;  %v780_v53 = vld [vmem:[#allocation8 + $0x14] sm:$0xf]  ;;  %v718_v54 = vld [vmem:[#allocation8 + $0x18] sm:$0xf0]  ;;  %v708_v56 = vld [vmem:[#allocation8] sm:$0xf] }
  0x45   : > { %v721_v55 = vor.u32 %v780_v53, %v718_v54  ;;  %v779_v57 = vld [vmem:[#allocation8 + $0x4] sm:$0xf0]  ;;  %v778_v58 = vld [vmem:[#allocation8 + $0x4] sm:$0xf]  ;;  %v710_v60 = vld [vmem:[#allocation8 + $0x8] sm:$0xf0] }
  0x46   : > { %v709_v59 = vor.u32 %v779_v57, %v708_v56  ;;  %v713_v61 = vor.u32 %v778_v58, %v710_v60  ;;  %v351_v62 = vld [vmem:[#allocation7] sm:$0x3]  ;;  %v427_v11 = vld [vmem:[%s1293_s4] sm:$0x3]  ;;  %s771_s22 = sshll.u32 %s1144_s8, 3  ;;  %s343_s8 = scalar_lea.vmem [#allocation10], %s683_s23 }
  0x47   : > { %515 = vmatpush.bf16.msra.mxu2 %v749_v30  ;;  %v353_v63 = vperm.slane %v351_v62, 0  ;;  %v354_v0 = vperm.slane %v351_v62, 1  ;;  %v429_v12 = vperm.slane %v427_v11, 0  ;;  %v430_v13 = vperm.slane %v427_v11, 1  ;;  %v873_v28 = vld [vmem:[%s1294_s5] ss:$0 sm:$0xff]  ;;  %s570_s19 = scalar_lea.hbm %s1296_s7, %s771_s22 }
  0x48   : > { %528 = vmatpush.bf16.msra.mxu3 %v753_v32  ;;  %v874_v30 = vld [vmem:[%s1295_s6] ss:$0 sm:$0xff]  ;;  %s572_s21 = sshll.u32 %s343_s8, 4  ;;  %s574_s18 = sshll.u32 %s570_s19, 4  ;;  %s573_s21 = int_to_ptr.vmem [resolvable:$true] %s572_s21  ;;  %s575_s18 = int_to_ptr.hbm [resolvable:$true] %s574_s18 }
  0x49   : > { %s560_s1 = scalar_lea.sflag [#allocation4], %s1227_s15  ;;  %s1013_s9 = sshra.s32 %s575_s18, 4  ;;  %s1014_s9 = int_to_ptr.hbm [resolvable:$true] %s1013_s9 }
  0x4a   : > { %s1015_s13 = scalar_lea.hbm %s1014_s9, 8  ;;  %s1019_s29 = scalar_lea.hbm %s1296_s7, 16 }
  0x4b   : > { %516 = vmatpush.bf16.msra.mxu2 %v741_v36  ;;  %p1016_p1 = scmp.ne.s32.totalorder %s1014_s9, %s1015_s13  ;;  %p1020_p12 = scmp.lt.s32.totalorder %s1014_s9, %s1296_s7 }
  0x4c   : > { %529 = vmatpush.bf16.msra.mxu3 %v745_v37  ;;  %p1021_p8 = scmp.lt.s32.totalorder %s1019_s29, %s1015_s13 }
  0x4d   : > { %p1017_p3 = pnand %p1016_p1, %p1196_p13 }
  0x4e   : > { %p1022_p7 = por %p1021_p8, %p1020_p12 }
  0x4f   : > { %517 = vmatpush.bf16.msra.mxu2 %v733_v42  ;;  %p1018_p5 = pneg %p1017_p3 }
  0x50   : > { %530 = vmatpush.bf16.msra.mxu3 %v737_v43 }
  0x51   : > { %p1023_p9 = pnand %p1022_p7, %p1018_p5 }
  0x53   : > { %518 = vmatpush.bf16.msra.mxu2 %v725_v48 }
  0x54   : > { %531 = vmatpush.bf16.msra.mxu3 %v729_v49 }
  0x57   : > { %519 = vmatpush.bf16.msra.mxu2 %v717_v52 }
  0x58   : > { %532 = vmatpush.bf16.msra.mxu3 %v721_v55 }
  0x5b   : > { %520 = vmatpush.bf16.msra.mxu2 %v709_v59 }
  0x5c   : > { %533 = vmatpush.bf16.msra.mxu3 %v713_v61 }
  0xbf   : > { %v390_v1 = vpop.f32.mrf.mxu0 }
  0xc0   : > { %v391_v2 = vadd.f32 %v390_v1, %v353_v63  ;;  %v403_v3 = vpop.f32.mrf.mxu1 }
  0xc1   : > { %v404_v4 = vadd.f32 %v403_v3, %v354_v0 }
  0xc2   : > { %v407_v5 = vmax.f32 %v391_v2, 0.0 }
  0xc3   : > { %v408_v6 = vmax.f32 %v404_v4, 0.0 }
  0xc5   : > { %v409_v7 = vadd.f32 %v408_v6, %v407_v5  ;;  %v545_v25 = vsub.f32 %v407_v5, %v408_v6 }
  0xc7   : > { %v392_v8 = vpop.f32.mrf.mxu0  ;;  %v410_v9 = vpack.c.bf16 %v409_v7, %v409_v7 }
  0xc8   : > { %v405_v10 = vpop.f32.mrf.mxu1 }
  0xc9   : > { %521 = vmatmul.bf16.vlgmr.msra.gmra.mxu2 %v410_v9  ;;  %534 = vmatmul.bf16.vlgmr.msra.gmra.mxu3 %v410_v9 }
 0x14c   : > { %v522_v14 = vpop.f32.mrf.mxu2  ;;  %v535_v15 = vpop.f32.mrf.mxu3 }
 0x14d   : > { %v523_v16 = vadd.f32 %v522_v14, %v429_v12  ;;  %v536_v17 = vadd.f32 %v535_v15, %v430_v13 }
 0x14f   : > { %v539_v18 = vsub.f32 %v523_v16, %v536_v17 }
 0x151   : > { %v540_v19 = vsub.f32 0.0, %v539_v18 }
 0x153   : > { %v541_v20 = vmul.f32 1.442695, %v540_v19 }
 0x154   : > { %v524_v21 = vpop.f32.mrf.mxu2  ;;  %v537_v22 = vpop.f32.mrf.mxu3 }
 0x155   : > { %875 = vpow2.f32 %v541_v20 }
 0x15b   : > { %v876_v23 = vpop.eup %875 }
 0x15c   : > { %v543_v24 = vadd.f32 1.0, %v876_v23 }
 0x15e   : > { %877 = vrcp.f32 %v543_v24 }
 0x164   : > { %v878_v26 = vpop.eup %877 }
 0x165   : > { %v546_v27 = vmul.f32 %v878_v26, %v545_v25 }
 0x167   : > { %v547_v29 = vadd.f32 %v546_v27, %v408_v6 }
 0x169   : > { %v552_v31 = vmul.f32 %v873_v28, %v547_v29 }
 0x16b   : > { %v557_v32 = vadd.f32 %v874_v30, %v552_v31 }
 0x16d   : > { %558 = vst [vmem:[%s343_s8] sm:$0xff] %v557_v32 }
 0x16e   : > { %1026 = shalt.err (!%p1023_p9)
}
 0x16f   : > { %808 = dma.vmem_to_hbm [thread:$0]  (%p1196_p13), %s573_s21, 128, %s575_s18, %s560_s1  }
 0x170 PF: > { %s586_s15 = sand.u32 1, %s1061_s24   ;;  %p1305_p10 = scmp.ge.s32.totalorder %s1073_s27, 2 }
 0x171   : > { %s587_s30 = scalar_lea.sflag [#allocation4], %s586_s15 }
 0x172   : > { %p825_p11 = pnand %p1305_p10, %p1201_p4 }
 0x174   : > { %p826_p0 = pneg %p825_p11 }
 0x176   : > { %1056 = dma.done.wait (%p826_p0), %s587_s30, 128  }
 0x177   : > { %1058 = vsyncadd (%p826_p0), %s587_s30, 4294967168  ;;  %p22_p2 = scmp.ge.s32.totalorder %s1176_s10, 4   ;;  %s1306_s24 = smov %s1065_s25 }
 0x178   : > { %s1307_s25 = smov %s1069_s26  ;;  %s1308_s26 = smov %s1188_s11 }
 0x179   : > { %s1309_s27 = smov %s1176_s10  ;;  %24 = sbr.rel (!%p22_p2) target bundleno = 9 (0x9), region = 105 }
 0x17e   :  { %593 = vsyncpa [#allocation3], 1 }
 0x17f   :  { %595 = vsyncpa [#allocation3 + $0x1], 1 }
 0x180   :  { %596 = vsyncpa [#allocation6], 1 }
 0x181   :  { %597 = vsyncpa [#allocation9], 1 }
 0x182   :  { %598 = vsyncpa [#allocation4], 1 }
 0x183   :  { %600 = vsyncpa [#allocation4 + $0x1], 1 }

</bundles_post_ra>
